<compile_context>
chip_gen: v7x
topology: tpu7x:2x2x1
jax: 0.10.0
libtpu: 0.0.40
codegen_flags: <defaults>
</compile_context>

<pallas_src>
import jax
import jax.numpy as jnp
from jax import lax
from jax.experimental import pallas as pl
from jax.experimental.pallas import tpu as pltpu


def net_kernel(state_ref, action_ref,
               w1_ref, b1_ref, w2_ref, b2_ref, w3_ref, b3_ref,
               out_ref):
    # state_ref : (TB, S)   batch rows exactly as stored in HBM
    # action_ref: (1, TB)   int32, batch on lanes
    # w1: (Ha+Hc1, S)   w2: (Ha+Hc2, Ha+Hc1)   w3: (A+1, Ha+Hc2)  (block-diag)
    # out_ref   : (3, TB)   rows = [logprob, value, entropy]   (lane = batch)
    dot_dt = w1_ref.dtype
    trans_b = (((1,), (1,)), ((), ()))          # contract dim 1 of both -> A @ B^T

    x = state_ref[...]                           # (TB, S)
    if x.dtype != dot_dt:                        # trace-time no-op in the f32 path
        x = x.astype(dot_dt)
    act = action_ref[...]                        # (1, TB)

    # layer 1: (Ha+Hc1, S) x (TB, S)^T -> (Ha+Hc1, TB); batch lands on lanes.
    h1 = jnp.tanh(
        lax.dot_general(w1_ref[...], x, trans_b,
                        preferred_element_type=jnp.float32) + b1_ref[...])
    h2 = jnp.tanh(
        jnp.dot(w2_ref[...], h1.astype(dot_dt),
                preferred_element_type=jnp.float32) + b2_ref[...])
    z = jnp.dot(w3_ref[...], h2.astype(dot_dt),
                preferred_element_type=jnp.float32) + b3_ref[...]   # (A+1, TB)

    A = w3_ref.shape[0] - 1
    logits = z[:A, :]                            # (A, TB)
    value = z[A:A + 1, :]                        # (1, TB)

    # numerically stable softmax over the action axis (sublane axis; per-lane)
    m = jnp.max(logits, axis=0, keepdims=True)   # (1, TB)
    s = logits - m
    e = jnp.exp(s)
    denom = jnp.sum(e, axis=0, keepdims=True)    # (1, TB)
    log_z = jnp.log(denom)
    logp_all = s - log_z                         # (A, TB)

    # exact probabilities -> exact entropy = -sum(p * log p)  (matches reference)
    p_all = e / denom
    ent = -jnp.sum(p_all * logp_all, axis=0, keepdims=True)          # (1, TB)

    # Categorical.log_prob(action): one-hot select along the action axis
    row = lax.broadcasted_iota(jnp.int32, logits.shape, 0)           # (A, TB)
    onehot = (row == act).astype(jnp.float32)
    logp = jnp.sum(onehot * logp_all, axis=0, keepdims=True)         # (1, TB)

    # direct lane-dense row stores (no concat repack)
    out_ref[0:1, :] = logp
    out_ref[1:2, :] = value
    out_ref[2:3, :] = ent


def net_evaluate(state, action, packed_params, *,
                 tile_b=2048, bf16_matmul_inputs=False):
    """state: (B, S), action: (B,) int -> (3, B) slab [logprob; value; entropy]."""
    B, S = state.shape
    w1p, b1p, w2p, b2p, w3p, b3p = packed_params

    dot_dt = jnp.bfloat16 if bf16_matmul_inputs else jnp.float32
    if state.dtype != dot_dt:
        # TODO(synk): keep the rollout state buffer in this dtype upstream so this
        # convert (an extra HBM pass over `state`) disappears entirely.
        state = state.astype(dot_dt)
    if bf16_matmul_inputs:
        # Dot-input-only bf16 (v6e/v7x); biases + tanh/exp/log stay f32 (v5e-safe).
        w1p, w2p, w3p = (w.astype(jnp.bfloat16) for w in (w1p, w2p, w3p))

    act2 = action.astype(jnp.int32).reshape(1, B)   # metadata-only reshape, no HBM pass

    bp = 128 * pl.cdiv(B, 128)      # lane granularity of the batch
    tb = min(tile_b, bp)            # single grid step for small batches
    grid = (pl.cdiv(bp, tb),)

    batch_rows = lambda i: (i, 0)   # state: (tile_b, S) row blocks
    batch_lane = lambda i: (0, i)   # action / output: batch on lanes
    whole = lambda i: (0, 0)        # resident weights

    out = pl.pallas_call(
        net_kernel,
        out_shape=jax.ShapeDtypeStruct((3, B), jnp.float32),
        grid_spec=pltpu.PrefetchScalarGridSpec(
            num_scalar_prefetch=0,
            grid=grid,
            in_specs=[
                pl.BlockSpec((tb, S), batch_rows),      # state tile, read in place
                pl.BlockSpec((1, tb), batch_lane),      # action tile
                pl.BlockSpec(w1p.shape, whole), pl.BlockSpec(b1p.shape, whole),
                pl.BlockSpec(w2p.shape, whole), pl.BlockSpec(b2p.shape, whole),
                pl.BlockSpec(w3p.shape, whole), pl.BlockSpec(b3p.shape, whole),
            ],
            out_specs=pl.BlockSpec((3, tb), batch_lane),
        ),
        compiler_params=pltpu.CompilerParams(
            dimension_semantics=("parallel",)),
    )(state, act2, w1p, b1p, w2p, b2p, w3p, b3p)

    # Single (3, B) slab; callers index rows (out[0]=logprob, out[1]=value, out[2]=entropy).
    return out


def init_params(key, state_space, actor_layers, action_space, critic_layers):
    """nn.Linear-style init; weights in PyTorch [out, in] layout, biases [out]."""
    # The PyTorch module only has consistent shapes if actor_layers[0] == actor_layers[1]
    # (layer 2 outputs actor_layers[0], layer 3 consumes actor_layers[1]).
    assert actor_layers[0] == actor_layers[1], (
        "Net requires actor_layers[0] == actor_layers[1] for consistent shapes")
    keys = jax.random.split(key, 12)

    def lin(kw, kb, fan_in, fan_out):
        bound = 1.0 / (float(fan_in) ** 0.5)
        w = jax.random.uniform(kw, (fan_out, fan_in), jnp.float32, -bound, bound)
        b = jax.random.uniform(kb, (fan_out,), jnp.float32, -bound, bound)
        return w, b

    aw1, ab1 = lin(keys[0], keys[1], state_space, actor_layers[0])
    aw2, ab2 = lin(keys[2], keys[3], actor_layers[0], actor_layers[0])
    aw3, ab3 = lin(keys[4], keys[5], actor_layers[1], action_space)
    cw1, cb1 = lin(keys[6], keys[7], state_space, critic_layers[0])
    cw2, cb2 = lin(keys[8], keys[9], critic_layers[0], critic_layers[1])
    cw3, cb3 = lin(keys[10], keys[11], critic_layers[1], 1)
    return (aw1, ab1, aw2, ab2, aw3, ab3, cw1, cb1, cw2, cb2, cw3, cb3)


def pack_params(raw):
    """Fuse actor+critic weights: concat layer 1, block-diagonal layers 2/3."""
    (aw1, ab1, aw2, ab2, aw3, ab3, cw1, cb1, cw2, cb2, cw3, cb3) = raw
    ha = aw1.shape[0]          # actor hidden
    hc1 = cw1.shape[0]         # critic hidden 1
    hc2 = cw2.shape[0]         # critic hidden 2
    a = aw3.shape[0]           # action_space

    w1p = jnp.concatenate([aw1, cw1], axis=0)                        # (Ha+Hc1, S)
    b1p = jnp.concatenate([ab1, cb1], axis=0)[:, None]

    w2p = jnp.block([[aw2, jnp.zeros((ha, hc1), jnp.float32)],
                     [jnp.zeros((hc2, ha), jnp.float32), cw2]])      # (Ha+Hc2, Ha+Hc1)
    b2p = jnp.concatenate([ab2, cb2], axis=0)[:, None]

    w3p = jnp.block([[aw3, jnp.zeros((a, hc2), jnp.float32)],
                     [jnp.zeros((1, ha), jnp.float32), cw3]])        # (A+1, Ha+Hc2)
    b3p = jnp.concatenate([ab3, cb3], axis=0)[:, None]
    return w1p, b1p, w2p, b2p, w3p, b3p


if __name__ == "__main__":
    configs = {
        "state_space": 32,
        "actor_layers": [32, 32],
        "critic_layers": [32, 32],
        "action_space": 8,
    }
    B = 256  # small demo batch -> min(tile_b, 256) = 256 => a single grid step

    key = jax.random.PRNGKey(0)
    k_params, k_state, k_act = jax.random.split(key, 3)

    raw_params = init_params(k_params,
                             configs["state_space"],
                             configs["actor_layers"],
                             configs["action_space"],
                             configs["critic_layers"])
    packed = pack_params(raw_params)

    state = jax.random.normal(k_state, (B, configs["state_space"]),
                              dtype=jnp.float32)
    action = jax.random.randint(k_act, (B,), 0, configs["action_space"],
                                dtype=jnp.int32)

    out = net_evaluate(state, action, packed)      # (3, B) slab
    jax.block_until_ready(out)
    logp, value, entropy = out[0], out[1], out[2]

    # Pure-JAX reference (unfused, batch-major), matches the PyTorch module.
    (aw1, ab1, aw2, ab2, aw3, ab3, cw1, cb1, cw2, cb2, cw3, cb3) = raw_params
    h = jnp.tanh(state @ aw1.T + ab1)
    h = jnp.tanh(h @ aw2.T + ab2)
    logits = h @ aw3.T + ab3
    lp_all = jax.nn.log_softmax(logits, axis=-1)
    p_all = jax.nn.softmax(logits, axis=-1)
    ref_logp = jnp.take_along_axis(lp_all, action[:, None], axis=-1)[:, 0]
    ref_ent = -jnp.sum(p_all * lp_all, axis=-1)
    c = jnp.tanh(state @ cw1.T + cb1)
    c = jnp.tanh(c @ cw2.T + cb2)
    ref_val = (c @ cw3.T + cb3)[:, 0]

    assert jnp.allclose(logp, ref_logp, atol=1e-4), "logprob mismatch"
    assert jnp.allclose(value, ref_val, atol=1e-4), "value mismatch"
    assert jnp.allclose(entropy, ref_ent, atol=1e-4), "entropy mismatch"

    print("KERNEL_OK")
</pallas_src>

<mosaic_0001>
module attributes {stable_mosaic.version = 11 : i64} {
  func.func @net_kernel(%arg0: i32, %arg1: memref<256x32xf32, #tpu.memory_space<vmem>>, %arg2: memref<1x256xi32, #tpu.memory_space<vmem>>, %arg3: memref<64x32xf32, #tpu.memory_space<vmem>>, %arg4: memref<64x1xf32, #tpu.memory_space<vmem>>, %arg5: memref<64x64xf32, #tpu.memory_space<vmem>>, %arg6: memref<64x1xf32, #tpu.memory_space<vmem>>, %arg7: memref<9x64xf32, #tpu.memory_space<vmem>>, %arg8: memref<9x1xf32, #tpu.memory_space<vmem>>, %arg9: memref<3x256xf32, #tpu.memory_space<vmem>>) attributes {dimension_semantics = [#tpu.dimension_semantics<parallel>], iteration_bounds = array<i64: 1>, scalar_prefetch = 0 : i64, scratch_operands = 0 : i64, tpu.core_type = #tpu.core_type<tc>, window_params = [{transform_indices = @transform_0, window_bounds = array<i64: 256, 32>}, {transform_indices = @transform_1, window_bounds = array<i64: 1, 256>}, {pipeline_mode = #tpu.pipeline_mode<synchronous>, transform_indices = @transform_2, window_bounds = array<i64: 64, 32>}, {pipeline_mode = #tpu.pipeline_mode<synchronous>, transform_indices = @transform_3, window_bounds = array<i64: 64, 1>}, {pipeline_mode = #tpu.pipeline_mode<synchronous>, transform_indices = @transform_4, window_bounds = array<i64: 64, 64>}, {pipeline_mode = #tpu.pipeline_mode<synchronous>, transform_indices = @transform_5, window_bounds = array<i64: 64, 1>}, {pipeline_mode = #tpu.pipeline_mode<synchronous>, transform_indices = @transform_6, window_bounds = array<i64: 9, 64>}, {pipeline_mode = #tpu.pipeline_mode<synchronous>, transform_indices = @transform_7, window_bounds = array<i64: 9, 1>}, {transform_indices = @transform_8, window_bounds = array<i64: 3, 256>}]} {
    %c0 = arith.constant 0 : index
    %c0_0 = arith.constant 0 : index
    %0 = vector.load %arg1[%c0, %c0_0] : memref<256x32xf32, #tpu.memory_space<vmem>>, vector<256x32xf32>
    %c0_1 = arith.constant 0 : index
    %c0_2 = arith.constant 0 : index
    %1 = vector.load %arg2[%c0_1, %c0_2] : memref<1x256xi32, #tpu.memory_space<vmem>>, vector<1x256xi32>
    %c0_3 = arith.constant 0 : index
    %c0_4 = arith.constant 0 : index
    %2 = vector.load %arg3[%c0_3, %c0_4] : memref<64x32xf32, #tpu.memory_space<vmem>>, vector<64x32xf32>
    %cst = arith.constant dense<0.000000e+00> : vector<64x256xf32>
    %3 = tpu.matmul %2, %0, %cst {dimension_numbers = #tpu.dot_dimension_numbers<[1], [1], [0], [0], [0, 0, 1, 0], [], []>} : vector<64x32xf32>, vector<256x32xf32>, vector<64x256xf32> -> vector<64x256xf32>
    %c0_5 = arith.constant 0 : index
    %c0_6 = arith.constant 0 : index
    %4 = vector.load %arg4[%c0_5, %c0_6] : memref<64x1xf32, #tpu.memory_space<vmem>>, vector<64x1xf32>
    %5 = vector.broadcast %4 : vector<64x1xf32> to vector<64x256xf32>
    %6 = arith.addf %3, %5 : vector<64x256xf32>
    %7 = math.tanh %6 : vector<64x256xf32>
    %c0_7 = arith.constant 0 : index
    %c0_8 = arith.constant 0 : index
    %8 = vector.load %arg5[%c0_7, %c0_8] : memref<64x64xf32, #tpu.memory_space<vmem>>, vector<64x64xf32>
    %cst_9 = arith.constant dense<0.000000e+00> : vector<64x256xf32>
    %9 = tpu.matmul %8, %7, %cst_9 {dimension_numbers = #tpu.dot_dimension_numbers<[1], [0], [0], [1], [0, 0, 1, 1], [], []>} : vector<64x64xf32>, vector<64x256xf32>, vector<64x256xf32> -> vector<64x256xf32>
    %c0_10 = arith.constant 0 : index
    %c0_11 = arith.constant 0 : index
    %10 = vector.load %arg6[%c0_10, %c0_11] : memref<64x1xf32, #tpu.memory_space<vmem>>, vector<64x1xf32>
    %11 = vector.broadcast %10 : vector<64x1xf32> to vector<64x256xf32>
    %12 = arith.addf %9, %11 : vector<64x256xf32>
    %13 = math.tanh %12 : vector<64x256xf32>
    %c0_12 = arith.constant 0 : index
    %c0_13 = arith.constant 0 : index
    %14 = vector.load %arg7[%c0_12, %c0_13] : memref<9x64xf32, #tpu.memory_space<vmem>>, vector<9x64xf32>
    %cst_14 = arith.constant dense<0.000000e+00> : vector<9x256xf32>
    %15 = tpu.matmul %14, %13, %cst_14 {dimension_numbers = #tpu.dot_dimension_numbers<[1], [0], [0], [1], [0, 0, 1, 1], [], []>} : vector<9x64xf32>, vector<64x256xf32>, vector<9x256xf32> -> vector<9x256xf32>
    %c0_15 = arith.constant 0 : index
    %c0_16 = arith.constant 0 : index
    %16 = vector.load %arg8[%c0_15, %c0_16] : memref<9x1xf32, #tpu.memory_space<vmem>>, vector<9x1xf32>
    %17 = vector.broadcast %16 : vector<9x1xf32> to vector<9x256xf32>
    %18 = arith.addf %15, %17 : vector<9x256xf32>
    %19 = vector.extract_strided_slice %18 {offsets = [0, 0], sizes = [8, 256], strides = [1, 1]} : vector<9x256xf32> to vector<8x256xf32>
    %20 = vector.extract_strided_slice %18 {offsets = [8, 0], sizes = [1, 256], strides = [1, 1]} : vector<9x256xf32> to vector<1x256xf32>
    %cst_17 = arith.constant dense<0xFF800000> : vector<256xf32>
    %21 = vector.multi_reduction <maximumf>, %19, %cst_17 [0] : vector<8x256xf32> to vector<256xf32>
    %22 = vector.shape_cast %21 : vector<256xf32> to vector<1x256xf32>
    %23 = vector.broadcast %22 : vector<1x256xf32> to vector<8x256xf32>
    %24 = arith.subf %19, %23 : vector<8x256xf32>
    %25 = math.exp %24 : vector<8x256xf32>
    %cst_18 = arith.constant dense<0.000000e+00> : vector<256xf32>
    %26 = vector.multi_reduction <add>, %25, %cst_18 [0] : vector<8x256xf32> to vector<256xf32>
    %27 = vector.shape_cast %26 : vector<256xf32> to vector<1x256xf32>
    %28 = math.log %27 : vector<1x256xf32>
    %29 = vector.broadcast %28 : vector<1x256xf32> to vector<8x256xf32>
    %30 = arith.subf %24, %29 : vector<8x256xf32>
    %31 = vector.broadcast %27 : vector<1x256xf32> to vector<8x256xf32>
    %32 = arith.divf %25, %31 : vector<8x256xf32>
    %33 = arith.mulf %32, %30 : vector<8x256xf32>
    %cst_19 = arith.constant dense<0.000000e+00> : vector<256xf32>
    %34 = vector.multi_reduction <add>, %33, %cst_19 [0] : vector<8x256xf32> to vector<256xf32>
    %35 = vector.shape_cast %34 : vector<256xf32> to vector<1x256xf32>
    %cst_20 = arith.constant 0.000000e+00 : f32
    %36 = vector.broadcast %cst_20 : f32 to vector<1x256xf32>
    %37 = arith.subf %36, %35 : vector<1x256xf32>
    %38 = tpu.iota {dimensions = array<i32: 0>} : vector<8x256xi32>
    %39 = vector.broadcast %1 : vector<1x256xi32> to vector<8x256xi32>
    %40 = arith.cmpi eq, %38, %39 : vector<8x256xi32>
    %41 = arith.extui %40 : vector<8x256xi1> to vector<8x256xi32>
    %42 = arith.sitofp %41 : vector<8x256xi32> to vector<8x256xf32>
    %43 = arith.mulf %42, %30 : vector<8x256xf32>
    %cst_21 = arith.constant dense<0.000000e+00> : vector<256xf32>
    %44 = vector.multi_reduction <add>, %43, %cst_21 [0] : vector<8x256xf32> to vector<256xf32>
    %45 = vector.shape_cast %44 : vector<256xf32> to vector<1x256xf32>
    %c0_22 = arith.constant 0 : index
    %c0_23 = arith.constant 0 : index
    %46 = vector.load %arg9[%c0_22, %c0_23] : memref<3x256xf32, #tpu.memory_space<vmem>>, vector<1x256xf32>
    tpu.vector_store %arg9[%c0_22, %c0_23], %45 {strides = array<i32>} : memref<3x256xf32, #tpu.memory_space<vmem>>, vector<1x256xf32>,
    %c1 = arith.constant 1 : index
    %c0_24 = arith.constant 0 : index
    %47 = vector.load %arg9[%c1, %c0_24] : memref<3x256xf32, #tpu.memory_space<vmem>>, vector<1x256xf32>
    tpu.vector_store %arg9[%c1, %c0_24], %20 {strides = array<i32>} : memref<3x256xf32, #tpu.memory_space<vmem>>, vector<1x256xf32>,
    %c2 = arith.constant 2 : index
    %c0_25 = arith.constant 0 : index
    %48 = vector.load %arg9[%c2, %c0_25] : memref<3x256xf32, #tpu.memory_space<vmem>>, vector<1x256xf32>
    tpu.vector_store %arg9[%c2, %c0_25], %37 {strides = array<i32>} : memref<3x256xf32, #tpu.memory_space<vmem>>, vector<1x256xf32>,
    return
  }
  func.func @transform_0(%arg0: i32) -> (i32, i32) {
    %c0_i32 = arith.constant 0 : i32
    %c0_i32_0 = arith.constant 0 : i32
    return %arg0, %c0_i32 : i32, i32
  }
  func.func @transform_1(%arg0: i32) -> (i32, i32) {
    %c0_i32 = arith.constant 0 : i32
    %c0_i32_0 = arith.constant 0 : i32
    return %c0_i32, %arg0 : i32, i32
  }
  func.func @transform_2(%arg0: i32) -> (i32, i32) {
    %c0_i32 = arith.constant 0 : i32
    %c0_i32_0 = arith.constant 0 : i32
    %c0_i32_1 = arith.constant 0 : i32
    return %c0_i32, %c0_i32_0 : i32, i32
  }
  func.func @transform_3(%arg0: i32) -> (i32, i32) {
    %c0_i32 = arith.constant 0 : i32
    %c0_i32_0 = arith.constant 0 : i32
    %c0_i32_1 = arith.constant 0 : i32
    return %c0_i32, %c0_i32_0 : i32, i32
  }
  func.func @transform_4(%arg0: i32) -> (i32, i32) {
    %c0_i32 = arith.constant 0 : i32
    %c0_i32_0 = arith.constant 0 : i32
    %c0_i32_1 = arith.constant 0 : i32
    return %c0_i32, %c0_i32_0 : i32, i32
  }
  func.func @transform_5(%arg0: i32) -> (i32, i32) {
    %c0_i32 = arith.constant 0 : i32
    %c0_i32_0 = arith.constant 0 : i32
    %c0_i32_1 = arith.constant 0 : i32
    return %c0_i32, %c0_i32_0 : i32, i32
  }
  func.func @transform_6(%arg0: i32) -> (i32, i32) {
    %c0_i32 = arith.constant 0 : i32
    %c0_i32_0 = arith.constant 0 : i32
    %c0_i32_1 = arith.constant 0 : i32
    return %c0_i32, %c0_i32_0 : i32, i32
  }
  func.func @transform_7(%arg0: i32) -> (i32, i32) {
    %c0_i32 = arith.constant 0 : i32
    %c0_i32_0 = arith.constant 0 : i32
    %c0_i32_1 = arith.constant 0 : i32
    return %c0_i32, %c0_i32_0 : i32, i32
  }
  func.func @transform_8(%arg0: i32) -> (i32, i32) {
    %c0_i32 = arith.constant 0 : i32
    %c0_i32_0 = arith.constant 0 : i32
    return %c0_i32, %arg0 : i32, i32
  }
}

</mosaic_0001>

<bundles_post_ra>
// kernel: tpu_custom_call.1
= control target key start
LH: loop header
LB: loop body
LE: loop exit
PB: predicated region body
PF: predicated region fallthrough
CT: control target
= control target key end

     0   :  { %vm119_vm0 = vcmask 261120   ;;  %v1125_v7 = vmov 0   ;;  %s1498_s0 = inlined_call_operand.vmem [shape: f32[256,32], index: 0, kind: input, shape index: {}]   ;;  %s1499_s1 = inlined_call_operand.vmem [shape: s32[1,256], index: 1, kind: input, shape index: {}]   ;;  %s1500_s2 = inlined_call_operand.vmem [shape: f32[64,32], index: 2, kind: input, shape index: {}]   ;;  %s1501_s3 = inlined_call_operand.vmem [shape: f32[64,1], index: 3, kind: input, shape index: {}]   ;;  %s1502_s4 = inlined_call_operand.vmem [shape: f32[64,64], index: 4, kind: input, shape index: {}]   ;;  %s1503_s5 = inlined_call_operand.vmem [shape: f32[64,1], index: 5, kind: input, shape index: {}]   ;;  %s1504_s6 = inlined_call_operand.vmem [shape: f32[9,64], index: 6, kind: input, shape index: {}]   ;;  %s1505_s7 = inlined_call_operand.vmem [shape: f32[9,1], index: 7, kind: input, shape index: {}]   ;;  %s1506_s8 = inlined_call_operand.hbm [shape: f32[3,256], index: 8, kind: output, shape index: {}]  }
   0x1   :  { %v46_v0 = vld [vmem:[%s1498_s0 + $0x80] sm:$0xff]  ;;  %v47_v1 = vld [vmem:[%s1498_s0 + $0x88] sm:$0xff]  ;;  %vm1185_vm1 = vmpackc.low %vm119_vm0, %vm119_vm0  ;;  %1023 = vset.pattern.permute.xlu0 %v1125_v7  ;;  %1024 = vset.pattern.permute.xlu1 %v1125_v7 }
   0x2   :  { %v30_v2 = vld [vmem:[%s1498_s0] sm:$0xff]  ;;  %v939_v3 = vpack.c.bf16 %v47_v1, %v46_v0  ;;  %v31_v5 = vld [vmem:[%s1498_s0 + $0x8] sm:$0xff]  ;;  %v48_v6 = vld [vmem:[%s1498_s0 + $0x90] sm:$0xff] }
   0x3   :  { %v942_v8 = vpack.c.bf16 %v31_v5, %v30_v2  ;;  %v49_v9 = vld [vmem:[%s1498_s0 + $0x98] sm:$0xff]  ;;  %v32_v11 = vld [vmem:[%s1498_s0 + $0x10] sm:$0xff]  ;;  %v50_v13 = vld [vmem:[%s1498_s0 + $0xa0] sm:$0xff] }
   0x4   :  { %941 = vmatprep.subr.msk.bf16.mxu0 %vm1185_vm1, %v939_v3  ;;  %v945_v10 = vpack.c.bf16 %v49_v9, %v48_v6  ;;  %v33_v12 = vld [vmem:[%s1498_s0 + $0x18] sm:$0xff]  ;;  %v51_v14 = vld [vmem:[%s1498_s0 + $0xa8] sm:$0xff]  ;;  %v1219_v17 = vld [vmem:[%s1500_s2] sm:$0xff] }
   0x5   :  { %944 = vmatpush3.bf16.xpose.msk.msra.mxu0 %vm1185_vm1, %v942_v8  ;;  %v948_v15 = vpack.c.bf16 %v33_v12, %v32_v11  ;;  %v951_v16 = vpack.c.bf16 %v51_v14, %v50_v13  ;;  %923 = vmatprep.mubr.msk.f32.mxu0 %vm119_vm0, %v1219_v17  ;;  %v34_v18 = vld [vmem:[%s1498_s0 + $0x20] sm:$0xff]  ;;  %v35_v19 = vld [vmem:[%s1498_s0 + $0x28] sm:$0xff]  ;;  %v52_v21 = vld [vmem:[%s1498_s0 + $0xb0] sm:$0xff] }
   0x6   :  { %947 = vmatprep.subr.msk.bf16.mxu0 %vm1185_vm1, %v945_v10  ;;  %v71_v20 = vld [vmem:[%s1501_s3] sm:$0xff]  ;;  %v53_v22 = vld [vmem:[%s1498_s0 + $0xb8] sm:$0xff]  ;;  %v73_v23 = vld [vmem:[%s1501_s3 + $0x10] sm:$0xff]  ;;  %v954_v25 = vpack.c.bf16 %v35_v19, %v34_v18 }
   0x7   :  { %81 = vperm.xlu0 %1023, %v71_v20   ;;  %91 = vperm.xlu1 %1024, %v73_v23   ;;  %v72_v24 = vld [vmem:[%s1501_s3 + $0x8] sm:$0xff]  ;;  %v74_v26 = vld [vmem:[%s1501_s3 + $0x18] sm:$0xff]  ;;  %v957_v27 = vpack.c.bf16 %v53_v22, %v52_v21  ;;  %v75_v28 = vld [vmem:[%s1501_s3 + $0x20] sm:$0xff] }
   0xb   :  { %86 = vperm.xlu0 %1023, %v72_v24   ;;  %96 = vperm.xlu1 %1024, %v74_v26  }
   0xd   :  { %950 = vmatpush3.bf16.xpose.msk.msra.mxu0 %vm1185_vm1, %v948_v15 }
   0xe   :  { %953 = vmatprep.subr.msk.bf16.mxu0 %vm1185_vm1, %v951_v16 }
   0xf   :  { %13 = vsyncpa [#allocation3], 0  ;;  %v76_v29 = vld [vmem:[%s1501_s3 + $0x28] sm:$0xff]  ;;  %v36_v30 = vld [vmem:[%s1498_s0 + $0x30] sm:$0xff]  ;;  %101 = vperm.xlu0 %1023, %v75_v28   ;;  %v1126_v12 = vmov 0.0   ;;  %vm425_vm2 = vcmask 523264  }
  0x10   :  { %v37_v31 = vld [vmem:[%s1498_s0 + $0x38] sm:$0xff]  ;;  %v54_v32 = vld [vmem:[%s1498_s0 + $0xc0] sm:$0xff]  ;;  %v55_v33 = vld [vmem:[%s1498_s0 + $0xc8] sm:$0xff]  ;;  %106 = vperm.xlu1 %1024, %v76_v29   ;;  %514 = vmatprep.mubr.f32.mxu1 %v1126_v12 }
  0x11   :  { %v77_v34 = vld [vmem:[%s1501_s3 + $0x30] sm:$0xff]  ;;  %v960_v35 = vpack.c.bf16 %v37_v31, %v36_v30  ;;  %v78_v36 = vld [vmem:[%s1501_s3 + $0x38] sm:$0xff]  ;;  %v963_v37 = vpack.c.bf16 %v55_v33, %v54_v32  ;;  %v377_v38 = vld [vmem:[%s1503_s5] sm:$0xff] }
  0x12   :  { %v378_v39 = vld [vmem:[%s1503_s5 + $0x8] sm:$0xff]  ;;  %v38_v40 = vld [vmem:[%s1498_s0 + $0x40] sm:$0xff]  ;;  %v56_v42 = vld [vmem:[%s1498_s0 + $0xd0] sm:$0xff] }
  0x13   :  { %111 = vperm.xlu0 %1023, %v77_v34   ;;  %v39_v41 = vld [vmem:[%s1498_s0 + $0x48] sm:$0xff]  ;;  %v57_v43 = vld [vmem:[%s1498_s0 + $0xd8] sm:$0xff]  ;;  %v379_v44 = vld [vmem:[%s1503_s5 + $0x10] sm:$0xff] }
  0x14   :  { %116 = vperm.xlu1 %1024, %v78_v36   ;;  %v966_v45 = vpack.c.bf16 %v39_v41, %v38_v40  ;;  %v380_v46 = vld [vmem:[%s1503_s5 + $0x18] sm:$0xff]  ;;  %v969_v47 = vpack.c.bf16 %v57_v43, %v56_v42  ;;  %v381_v48 = vld [vmem:[%s1503_s5 + $0x20] sm:$0xff]  ;;  %v382_v49 = vld [vmem:[%s1503_s5 + $0x28] sm:$0xff] }
  0x15   :  { %956 = vmatpush3.bf16.xpose.msk.msra.mxu0 %vm1185_vm1, %v954_v25  ;;  %v40_v50 = vld [vmem:[%s1498_s0 + $0x50] sm:$0xff]  ;;  %v41_v51 = vld [vmem:[%s1498_s0 + $0x58] sm:$0xff]  ;;  %v58_v52 = vld [vmem:[%s1498_s0 + $0xe0] sm:$0xff] }
  0x16   :  { %959 = vmatprep.subr.msk.bf16.mxu0 %vm1185_vm1, %v957_v27  ;;  %v59_v53 = vld [vmem:[%s1498_s0 + $0xe8] sm:$0xff]  ;;  %v383_v54 = vld [vmem:[%s1503_s5 + $0x30] sm:$0xff]  ;;  %v972_v55 = vpack.c.bf16 %v41_v51, %v40_v50  ;;  %v384_v56 = vld [vmem:[%s1503_s5 + $0x38] sm:$0xff] }
  0x17   :  { %387 = vperm.xlu0 %1023, %v377_v38   ;;  %v975_v57 = vpack.c.bf16 %v59_v53, %v58_v52  ;;  %v581_v58 = vld [vmem:[%s1505_s7] sm:$0xff]  ;;  %v582_v59 = vld [vmem:[%s1505_s7 + $0x8] sm:$0x1]  ;;  %v60_v62 = vld [vmem:[%s1498_s0 + $0xf0] sm:$0xff] }
  0x18   :  { %392 = vperm.xlu1 %1024, %v378_v39   ;;  %v42_v60 = vld [vmem:[%s1498_s0 + $0x60] sm:$0xff]  ;;  %v43_v61 = vld [vmem:[%s1498_s0 + $0x68] sm:$0xff]  ;;  %v61_v63 = vld [vmem:[%s1498_s0 + $0xf8] sm:$0xff] }
  0x19   :  { %v978_v0 = vpack.c.bf16 %v43_v61, %v42_v60  ;;  %v981_v1 = vpack.c.bf16 %v61_v63, %v60_v62  ;;  %v44_v2 = vld [vmem:[%s1498_s0 + $0x70] sm:$0xff]  ;;  %v45_v3 = vld [vmem:[%s1498_s0 + $0x78] sm:$0xff]  ;;  %v64_v6 = vld [vmem:[%s1500_s2 + $0x8] sm:$0xff] }
  0x1a   :  { %v984_v5 = vpack.c.bf16 %v45_v3, %v44_v2  ;;  %v65_v7 = vld [vmem:[%s1500_s2 + $0x10] sm:$0xff]  ;;  %v66_v4 = vld [vmem:[%s1500_s2 + $0x18] sm:$0xff]  ;;  %v67_v8 = vld [vmem:[%s1500_s2 + $0x20] sm:$0xff] }
  0x1b   :  { %397 = vperm.xlu0 %1023, %v379_v44   ;;  %v68_v9 = vld [vmem:[%s1500_s2 + $0x28] sm:$0xff]  ;;  %v69_v10 = vld [vmem:[%s1500_s2 + $0x30] sm:$0xff]  ;;  %v70_v11 = vld [vmem:[%s1500_s2 + $0x38] sm:$0xff] }
  0x1c   :  { %402 = vperm.xlu1 %1024, %v380_v46  }
  0x1d   :  { %962 = vmatpush3.bf16.xpose.msk.msra.mxu0 %vm1185_vm1, %v960_v35 }
  0x1e   :  { %965 = vmatprep.subr.msk.bf16.mxu0 %vm1185_vm1, %v963_v37 }
  0x1f   :  { %407 = vperm.xlu0 %1023, %v381_v48  }
  0x20   :  { %412 = vperm.xlu1 %1024, %v382_v49  }
  0x23   :  { %417 = vperm.xlu0 %1023, %v383_v54  }
  0x24   :  { %422 = vperm.xlu1 %1024, %v384_v56  }
  0x25   :  { %968 = vmatpush3.bf16.xpose.msk.msra.mxu0 %vm1185_vm1, %v966_v45 }
  0x26   :  { %971 = vmatprep.subr.msk.bf16.mxu0 %vm1185_vm1, %v969_v47 }
  0x27   :  { %585 = vperm.xlu0 %1023, %v581_v58  }
  0x28   :  { %590 = vperm.xlu1 %1024, %v582_v59  }
  0x2d   :  { %974 = vmatpush3.bf16.xpose.msk.msra.mxu0 %vm1185_vm1, %v972_v55 }
  0x2e   :  { %977 = vmatprep.subr.msk.bf16.mxu0 %vm1185_vm1, %v975_v57 }
  0x35   :  { %980 = vmatpush3.bf16.xpose.msk.msra.mxu0 %vm1185_vm1, %v978_v0 }
  0x36   :  { %983 = vmatprep.subr.msk.bf16.mxu0 %vm1185_vm1, %v981_v1 }
  0x3d   :  { %986 = vmatpush3.bf16.xpose.msk.msra.mxu0 %vm1185_vm1, %v984_v5 }
  0x44   :  { %924 = vmatmul.mubr.msk.f32.vlgmr.msra.gmra.mrb[0].mxu0 %vm119_vm0, %v1219_v17 }
  0x45   :  { %925 = vmatprep.mubr.msk.f32.mxu0 %vm119_vm0, %v64_v6 }
  0x48   :  { %926 = vmatmul.mubr.msk.f32.gmra.mrb[2].mxu0 %vm119_vm0, %v64_v6 }
  0x49   :  { %927 = vmatprep.mubr.msk.f32.mxu0 %vm119_vm0, %v65_v7 }
  0x4c   :  { %928 = vmatmul.mubr.msk.f32.gmra.mrb[4].mxu0 %vm119_vm0, %v65_v7 }
  0x4d   :  { %929 = vmatprep.mubr.msk.f32.mxu0 %vm119_vm0, %v66_v4 }
  0x50   :  { %930 = vmatmul.mubr.msk.f32.gmra.mrb[6].mxu0 %vm119_vm0, %v66_v4 }
  0x51   :  { %931 = vmatprep.mubr.msk.f32.mxu0 %vm119_vm0, %v67_v8 }
  0x54   :  { %932 = vmatmul.mubr.msk.f32.gmra.mrb[8].mxu0 %vm119_vm0, %v67_v8 }
  0x55   :  { %933 = vmatprep.mubr.msk.f32.mxu0 %vm119_vm0, %v68_v9 }
  0x58   :  { %934 = vmatmul.mubr.msk.f32.gmra.mrb[10].mxu0 %vm119_vm0, %v68_v9 }
  0x59   :  { %935 = vmatprep.mubr.msk.f32.mxu0 %vm119_vm0, %v69_v10 }
  0x5c   :  { %936 = vmatmul.mubr.msk.f32.gmra.mrb[12].mxu0 %vm119_vm0, %v69_v10 }
  0x5d   :  { %937 = vmatprep.mubr.msk.f32.mxu0 %vm119_vm0, %v70_v11 }
  0x60   :  { %938 = vmatmul.mubr.msk.f32.gmra.mrb[14].mxu0 %vm119_vm0, %v70_v11 }
  0x86   :  { %v82_v13 = vpop.permute.xlu0 %81  ;;  %v92_v22 = vpop.permute.xlu1 %91 }
  0x8a   :  { %v87_v18 = vpop.permute.xlu0 %86  ;;  %v97_v28 = vpop.permute.xlu1 %96 }
  0x8e   :  { %v102_v35 = vpop.permute.xlu0 %101 }
  0x8f   :  { %v107_v44 = vpop.permute.xlu1 %106 }
  0x92   :  { %v112_v51 = vpop.permute.xlu0 %111 }
  0x93   :  { %v117_v60 = vpop.permute.xlu1 %116 }
 0x117   :  { %v306_v14 = vpop.f32.mrb[0].mxu0 }
 0x118   :  { %v307_v15 = vadd.f32 %v306_v14, %v82_v13  ;;  %v308_v16 = vpop.f32.mrb[1].mxu0  ;;  %v369_v14 = vld [vmem:[%s1502_s4] sm:$0xff] }
 0x119   :  { %v309_v17 = vadd.f32 %v308_v16, %v82_v13  ;;  %v371_v16 = vld [vmem:[%s1502_s4 + $0x10] sm:$0xff] }
 0x11a   :  { %1025 = vtanh.f32 %v307_v15  ;;  %v370_v15 = vld [vmem:[%s1502_s4 + $0x8] sm:$0xff] }
 0x11b   :  { %v312_v19 = vpop.f32.mrb[2].mxu0  ;;  %1027 = vtanh.f32 %v309_v17  ;;  %v372_v17 = vld [vmem:[%s1502_s4 + $0x18] sm:$0xff] }
 0x11c   :  { %v313_v20 = vadd.f32 %v312_v19, %v87_v18  ;;  %v314_v21 = vpop.f32.mrb[3].mxu0  ;;  %v374_v19 = vld [vmem:[%s1502_s4 + $0x28] sm:$0xff] }
 0x11d   :  { %v315_v23 = vadd.f32 %v314_v21, %v87_v18  ;;  %v373_v18 = vld [vmem:[%s1502_s4 + $0x20] sm:$0xff]  ;;  %v376_v21 = vld [vmem:[%s1502_s4 + $0x38] sm:$0xff] }
 0x11e   :  { %1029 = vtanh.f32 %v313_v20  ;;  %v375_v20 = vld [vmem:[%s1502_s4 + $0x30] sm:$0xff] }
 0x11f   :  { %1031 = vtanh.f32 %v315_v23  ;;  %v318_v24 = vpop.f32.mrb[4].mxu0 }
 0x120   :  { %v319_v25 = vadd.f32 %v318_v24, %v92_v22  ;;  %v320_v26 = vpop.f32.mrb[5].mxu0 }
 0x121   :  { %v321_v27 = vadd.f32 %v320_v26, %v92_v22  ;;  %v388_v22 = vpop.permute.xlu0 %387 }
 0x122   :  { %1033 = vtanh.f32 %v319_v25 }
 0x123   :  { %v324_v29 = vpop.f32.mrb[6].mxu0  ;;  %1035 = vtanh.f32 %v321_v27  ;;  %v393_v27 = vpop.permute.xlu1 %392 }
 0x124   :  { %v325_v30 = vadd.f32 %v324_v29, %v97_v28  ;;  %v326_v31 = vpop.f32.mrb[7].mxu0  ;;  %v1026_v33 = vpop.eup %1025 }
 0x125   :  { %v327_v32 = vadd.f32 %v326_v31, %v97_v28  ;;  %v1028_v34 = vpop.eup %1027 }
 0x126   :  { %1037 = vtanh.f32 %v325_v30 }
 0x127   :  { %1039 = vtanh.f32 %v327_v32  ;;  %v330_v36 = vpop.f32.mrb[8].mxu0  ;;  %v398_v32 = vpop.permute.xlu0 %397 }
 0x128   :  { %v1030_v37 = vpop.eup %1029  ;;  %v331_v38 = vadd.f32 %v330_v36, %v102_v35  ;;  %v332_v39 = vpop.f32.mrb[9].mxu0 }
 0x129   :  { %v1032_v40 = vpop.eup %1031  ;;  %v333_v41 = vadd.f32 %v332_v39, %v102_v35  ;;  %v989_v42 = vpack.c.bf16 %v1030_v37, %v1026_v33  ;;  %v403_v37 = vpop.permute.xlu1 %402 }
 0x12a   :  { %v987_v43 = vpack.c.bf16 %v1032_v40, %v1028_v34  ;;  %1041 = vtanh.f32 %v331_v38 }
 0x12b   :  { %v336_v45 = vpop.f32.mrb[10].mxu0  ;;  %1043 = vtanh.f32 %v333_v41 }
 0x12c   :  { %v337_v46 = vadd.f32 %v336_v45, %v107_v44  ;;  %v338_v47 = vpop.f32.mrb[11].mxu0  ;;  %988 = vmatprep.subr.bf16.mxu1 %v987_v43  ;;  %v1034_v49 = vpop.eup %1033 }
 0x12d   :  { %v339_v48 = vadd.f32 %v338_v47, %v107_v44  ;;  %990 = vmatpush1.bf16.msra.mxu1 %v989_v42  ;;  %v1036_v50 = vpop.eup %1035  ;;  %v408_v44 = vpop.permute.xlu0 %407 }
 0x12e   :  { %1045 = vtanh.f32 %v337_v46 }
 0x12f   :  { %1047 = vtanh.f32 %v339_v48  ;;  %v342_v52 = vpop.f32.mrb[12].mxu0 }
 0x130   :  { %v1038_v53 = vpop.eup %1037  ;;  %v343_v54 = vadd.f32 %v342_v52, %v112_v51  ;;  %v344_v55 = vpop.f32.mrb[13].mxu0 }
 0x131   :  { %v1040_v56 = vpop.eup %1039  ;;  %v345_v57 = vadd.f32 %v344_v55, %v112_v51  ;;  %v993_v58 = vpack.c.bf16 %v1038_v53, %v1034_v49  ;;  %v413_v53 = vpop.permute.xlu1 %412 }
 0x132   :  { %v991_v59 = vpack.c.bf16 %v1040_v56, %v1036_v50  ;;  %1049 = vtanh.f32 %v343_v54 }
 0x133   :  { %v348_v61 = vpop.f32.mrb[14].mxu0  ;;  %1051 = vtanh.f32 %v345_v57 }
 0x134   :  { %v349_v62 = vadd.f32 %v348_v61, %v117_v60  ;;  %v350_v63 = vpop.f32.mrb[15].mxu0  ;;  %992 = vmatprep.subr.bf16.mxu1 %v991_v59  ;;  %v1042_v1 = vpop.eup %1041 }
 0x135   :  { %v351_v0 = vadd.f32 %v350_v63, %v117_v60  ;;  %994 = vmatpush1.bf16.msra.mxu1 %v993_v58  ;;  %v1044_v2 = vpop.eup %1043  ;;  %v418_v60 = vpop.permute.xlu0 %417 }
 0x136   :  { %1053 = vtanh.f32 %v349_v62 }
 0x137   :  { %1055 = vtanh.f32 %v351_v0 }
 0x138   :  { %v1046_v3 = vpop.eup %1045 }
 0x139   :  { %v1048_v5 = vpop.eup %1047  ;;  %v997_v6 = vpack.c.bf16 %v1046_v3, %v1042_v1 }
 0x13a   :  { %v995_v7 = vpack.c.bf16 %v1048_v5, %v1044_v2 }
 0x13c   :  { %996 = vmatprep.subr.bf16.mxu1 %v995_v7  ;;  %v1050_v4 = vpop.eup %1049 }
 0x13d   :  { %998 = vmatpush1.bf16.msra.mxu1 %v997_v6  ;;  %v1052_v8 = vpop.eup %1051  ;;  %v423_v6 = vpop.permute.xlu1 %422 }
 0x140   :  { %v1054_v9 = vpop.eup %1053 }
 0x141   :  { %v1056_v10 = vpop.eup %1055  ;;  %v1001_v11 = vpack.c.bf16 %v1054_v9, %v1050_v4 }
 0x142   :  { %v999_v13 = vpack.c.bf16 %v1056_v10, %v1052_v8 }
 0x144   :  { %1000 = vmatprep.subr.bf16.mxu1 %v999_v13 }
 0x145   :  { %1002 = vmatpush1.bf16.msra.mxu1 %v1001_v11 }
 0x148   :  { %879 = vmatmul.mubr.msk.f32.vlgmr.msra.gmra.mrb[0].mxu1 %vm425_vm2, %v369_v14 }
 0x149   :  { %520 = vmatprep.mubr.f32.mxu1 %v1126_v12 }
 0x14c   :  { %880 = vmatmul.mubr.msk.f32.gmra.mrb[2].mxu1 %vm425_vm2, %v370_v15 }
 0x14d   :  { %526 = vmatprep.mubr.f32.mxu1 %v1126_v12 }
 0x150   :  { %881 = vmatmul.mubr.msk.f32.gmra.mrb[4].mxu1 %vm425_vm2, %v371_v16 }
 0x151   :  { %532 = vmatprep.mubr.f32.mxu1 %v1126_v12 }
 0x154   :  { %882 = vmatmul.mubr.msk.f32.gmra.mrb[6].mxu1 %vm425_vm2, %v372_v17 }
 0x155   :  { %538 = vmatprep.mubr.f32.mxu1 %v1126_v12 }
 0x158   :  { %883 = vmatmul.mubr.msk.f32.gmra.mrb[8].mxu1 %vm425_vm2, %v373_v18 }
 0x159   :  { %544 = vmatprep.mubr.f32.mxu1 %v1126_v12 }
 0x15c   :  { %884 = vmatmul.mubr.msk.f32.gmra.mrb[10].mxu1 %vm425_vm2, %v374_v19 }
 0x15d   :  { %550 = vmatprep.mubr.f32.mxu1 %v1126_v12 }
 0x160   :  { %885 = vmatmul.mubr.msk.f32.gmra.mrb[12].mxu1 %vm425_vm2, %v375_v20 }
 0x161   :  { %556 = vmatprep.mubr.f32.mxu1 %v1126_v12 }
 0x164   :  { %886 = vmatmul.mubr.msk.f32.gmra.mrb[14].mxu1 %vm425_vm2, %v376_v21 }
 0x165   :  { %663 = vmatprep.mubr.f32.mxu1 %v1126_v12 }
 0x21b   :  { %v516_v23 = vpop.f32.mrb[0].mxu1 }
 0x21c   :  { %v517_v24 = vadd.f32 %v516_v23, %v388_v22  ;;  %v518_v25 = vpop.f32.mrb[1].mxu1  ;;  %v579_v23 = vld [vmem:[%s1504_s6] sm:$0xff] }
 0x21d   :  { %v519_v26 = vadd.f32 %v518_v25, %v388_v22  ;;  %v732_v25 = vlaneseq }
 0x21e   :  { %1057 = vtanh.f32 %v517_v24  ;;  %v580_v24 = vld [vmem:[%s1504_s6 + $0x8] sm:$0x1] }
 0x21f   :  { %v522_v28 = vpop.f32.mrb[2].mxu1  ;;  %1059 = vtanh.f32 %v519_v26  ;;  %v1127_v26 = vmov 1966171168   ;;  %vm1462_vm3 = vcmp.lt.s32.totalorder %v732_v25, 256 }
 0x220   :  { %v523_v29 = vadd.f32 %v522_v28, %v393_v27  ;;  %v524_v30 = vpop.f32.mrb[3].mxu1  ;;  %v586_v28 = vpop.permute.xlu0 %585 }
 0x221   :  { %v525_v31 = vadd.f32 %v524_v30, %v393_v27  ;;  %v766_v27 = vunpack.c.l.s4 %v1127_v26 }
 0x222   :  { %1061 = vtanh.f32 %v523_v29 }
 0x223   :  { %1063 = vtanh.f32 %v525_v31  ;;  %v528_v33 = vpop.f32.mrb[4].mxu1 }
 0x224   :  { %v529_v34 = vadd.f32 %v528_v33, %v398_v32  ;;  %v530_v35 = vpop.f32.mrb[5].mxu1 }
 0x225   :  { %v531_v36 = vadd.f32 %v530_v35, %v398_v32  ;;  %v1456_v32 = vshrl.u32 %v732_v25, 7 }
 0x226   :  { %1065 = vtanh.f32 %v529_v34  ;;  %v767_v34 = vunpack.c.0.s8 %v766_v27 }
 0x227   :  { %v534_v38 = vpop.f32.mrb[6].mxu1  ;;  %1067 = vtanh.f32 %v531_v36  ;;  %v591_v36 = vpop.permute.xlu1 %590 }
 0x228   :  { %v535_v39 = vadd.f32 %v534_v38, %v403_v37  ;;  %v536_v40 = vpop.f32.mrb[7].mxu1  ;;  %v1058_v42 = vpop.eup %1057 }
 0x229   :  { %v537_v41 = vadd.f32 %v536_v40, %v403_v37  ;;  %v1060_v43 = vpop.eup %1059 }
 0x22a   :  { %1069 = vtanh.f32 %v535_v39 }
 0x22b   :  { %1071 = vtanh.f32 %v537_v41  ;;  %v540_v45 = vpop.f32.mrb[8].mxu1 }
 0x22c   :  { %v1062_v46 = vpop.eup %1061  ;;  %v541_v47 = vadd.f32 %v540_v45, %v408_v44  ;;  %v542_v48 = vpop.f32.mrb[9].mxu1 }
 0x22d   :  { %v1064_v49 = vpop.eup %1063  ;;  %v543_v50 = vadd.f32 %v542_v48, %v408_v44  ;;  %v1005_v51 = vpack.c.bf16 %v1062_v46, %v1058_v42  ;;  %v1459_v44 = vsub.s32 %v767_v34, %v1456_v32 }
 0x22e   :  { %v1003_v52 = vpack.c.bf16 %v1064_v49, %v1060_v43  ;;  %1073 = vtanh.f32 %v541_v47 }
 0x22f   :  { %v546_v54 = vpop.f32.mrb[10].mxu1  ;;  %1075 = vtanh.f32 %v543_v50 }
 0x230   :  { %v547_v55 = vadd.f32 %v546_v54, %v413_v53  ;;  %v548_v56 = vpop.f32.mrb[11].mxu1  ;;  %1004 = vmatprep.subr.bf16.mxu1 %v1003_v52  ;;  %v1066_v58 = vpop.eup %1065 }
 0x231   :  { %v549_v57 = vadd.f32 %v548_v56, %v413_v53  ;;  %1006 = vmatpush1.bf16.msra.mxu1 %v1005_v51  ;;  %v1068_v59 = vpop.eup %1067 }
 0x232   :  { %1077 = vtanh.f32 %v547_v55 }
 0x233   :  { %1079 = vtanh.f32 %v549_v57  ;;  %v552_v61 = vpop.f32.mrb[12].mxu1 }
 0x234   :  { %v1070_v62 = vpop.eup %1069  ;;  %v553_v63 = vadd.f32 %v552_v61, %v418_v60  ;;  %v554_v0 = vpop.f32.mrb[13].mxu1 }
 0x235   :  { %v1072_v1 = vpop.eup %1071  ;;  %v555_v2 = vadd.f32 %v554_v0, %v418_v60  ;;  %v1009_v3 = vpack.c.bf16 %v1070_v62, %v1066_v58 }
 0x236   :  { %v1007_v5 = vpack.c.bf16 %v1072_v1, %v1068_v59  ;;  %1081 = vtanh.f32 %v553_v63 }
 0x237   :  { %v558_v7 = vpop.f32.mrb[14].mxu1  ;;  %1083 = vtanh.f32 %v555_v2 }
 0x238   :  { %v559_v4 = vadd.f32 %v558_v7, %v423_v6  ;;  %v560_v8 = vpop.f32.mrb[15].mxu1  ;;  %1008 = vmatprep.subr.bf16.mxu1 %v1007_v5  ;;  %v1074_v10 = vpop.eup %1073 }
 0x239   :  { %v561_v9 = vadd.f32 %v560_v8, %v423_v6  ;;  %1010 = vmatpush1.bf16.msra.mxu1 %v1009_v3  ;;  %v1076_v11 = vpop.eup %1075 }
 0x23a   :  { %1085 = vtanh.f32 %v559_v4 }
 0x23b   :  { %1087 = vtanh.f32 %v561_v9 }
 0x23c   :  { %v1078_v13 = vpop.eup %1077 }
 0x23d   :  { %v1080_v14 = vpop.eup %1079  ;;  %v1013_v15 = vpack.c.bf16 %v1078_v13, %v1074_v10  ;;  %v62_v13 = vld [vmem:[%s1499_s1] sm:$0x3]  ;;  %s1128_s1 = smov [#allocation2]  }
 0x23e   :  { %v1011_v16 = vpack.c.bf16 %v1080_v14, %v1076_v11  ;;  %v736_v11 = vsub.s32 0, %v1456_v32  ;;  %v740_v14 = vsub.s32 1, %v1456_v32  ;;  %s831_s3 = sshll.u32 %s1128_s1, 4  ;;  %s832_s3 = int_to_ptr.vmem [resolvable:$true] %s831_s3 }
 0x23f   :  { %s1101_s21 = scalar_lea.vmem %s832_s3, 128  ;;  %p1106_p1 = scmp.lt.s32.totalorder %s832_s3, %s832_s3 }
 0x240   :  { %1012 = vmatprep.subr.bf16.mxu1 %v1011_v16  ;;  %v1082_v17 = vpop.eup %1081  ;;  %v741_v16 = vrot.slane %v62_v13, %v740_v14  ;;  %p1102_p0 = scmp.ne.s32.totalorder %s832_s3, %s1101_s21  ;;  %p1107_p2 = scmp.lt.s32.totalorder %s1101_s21, %s1101_s21 }
 0x241   :  { %1014 = vmatpush1.bf16.msra.mxu1 %v1013_v15  ;;  %v1084_v18 = vpop.eup %1083  ;;  %v737_v15 = vrot.slane %v62_v13, %v736_v11 }
 0x242   :  { %vm743_vm5 = vcmp.eq.s32.totalorder %v1456_v32, %v741_v16  ;;  %p1108_p3 = por %p1107_p2, %p1106_p1 }
 0x243   :  { %vm742_vm4 = vcmp.eq.s32.totalorder %v1456_v32, %v737_v15  ;;  %v890_v26 = vsel %vm743_vm5, 1.0, %v1126_v12 }
 0x244   :  { %v1086_v19 = vpop.eup %1085  ;;  %p1109_p4 = pnand %p1108_p3, %p1102_p0 }
 0x245   :  { %v1088_v20 = vpop.eup %1087  ;;  %v1017_v21 = vpack.c.bf16 %v1086_v19, %v1082_v17 }
 0x246   :  { %v1015_v22 = vpack.c.bf16 %v1088_v20, %v1084_v18 }
 0x248   :  { %1016 = vmatprep.subr.bf16.mxu1 %v1015_v22 }
 0x249   :  { %1018 = vmatpush1.bf16.msra.mxu1 %v1017_v21  ;;  %v889_v21 = vsel %vm742_vm4, 1.0, %v1126_v12 }
 0x24c   :  { %887 = vmatmul.mubr.msk.f32.vlgmr.msra.gmra.mrb[16].mxu1 %vm425_vm2, %v579_v23 }
 0x24d   :  { %669 = vmatprep.mubr.f32.mxu1 %v1126_v12 }
 0x250   :  { %888 = vmatmul.mubr.msk.f32.gmra.mrb[18].mxu1 %vm425_vm2, %v580_v24 }
 0x31f   :  { %v665_v29 = vpop.f32.mrb[16].mxu1 }
 0x320   :  { %v666_v30 = vadd.f32 %v665_v29, %v586_v28  ;;  %v667_v31 = vpop.f32.mrb[17].mxu1 }
 0x321   :  { %v668_v33 = vadd.f32 %v667_v31, %v586_v28 }
 0x322   :  { %v676_v35 = vrot.slane %v666_v30, 4 }
 0x323   :  { %v682_v37 = vrot.slane %v668_v33, 4  ;;  %v671_v38 = vpop.f32.mrb[18].mxu1 }
 0x324   :  { %v677_v39 = vmax.f32 %v666_v30, %v676_v35  ;;  %v672_v40 = vadd.f32 %v671_v38, %v591_v36  ;;  %v673_v41 = vpop.f32.mrb[19].mxu1 }
 0x325   :  { %v683_v42 = vmax.f32 %v668_v33, %v682_v37  ;;  %v674_v43 = vadd.f32 %v673_v41, %v591_v36 }
 0x326   :  { %v678_v45 = vrot.slane %v677_v39, 2 }
 0x327   :  { %v684_v46 = vrot.slane %v683_v42, 2  ;;  %v787_v47 = vcombine.low %v672_v40, %v674_v43 }
 0x328   :  { %v679_v48 = vmax.f32 %v677_v39, %v678_v45 }
 0x329   :  { %v685_v49 = vmax.f32 %v683_v42, %v684_v46  ;;  %v794_v50 = vrot.slane %v787_v47, %v1459_v44 }
 0x32a   :  { %v680_v51 = vrot.slane %v679_v48, 1 }
 0x32b   :  { %v686_v53 = vrot.slane %v685_v49, 1  ;;  %v801_v54 = vrot.slane %v794_v50, %v1459_v44 }
 0x32c   :  { %v681_v55 = vmax.f32 %v679_v48, %v680_v51 }
 0x32d   :  { %v687_v56 = vmax.f32 %v685_v49, %v686_v53  ;;  %804 = vst.msk [vmem:[#allocation2 + $0x1] ss:$4 sm:$0x3] %vm1462_vm3, %v801_v54 }
 0x32e   :  { %v688_v57 = vsub.f32 %v666_v30, %v681_v55 }
 0x32f   :  { %v689_v58 = vsub.f32 %v668_v33, %v687_v56 }
 0x330   :  { %v690_v59 = vmul.f32 1.442695, %v688_v57 }
 0x331   :  { %v692_v60 = vmul.f32 1.442695, %v689_v58 }
 0x332   :  { %1089 = vpow2.f32 %v690_v59 }
 0x333   :  { %1091 = vpow2.f32 %v692_v60 }
 0x33c   :  { %v1090_v61 = vpop.eup %1089 }
 0x33d   :  { %v1092_v62 = vpop.eup %1091  ;;  %v694_v63 = vrot.slane %v1090_v61, 4 }
 0x33e   :  { %v700_v0 = vrot.slane %v1092_v62, 4 }
 0x33f   :  { %v695_v1 = vadd.f32 %v1090_v61, %v694_v63 }
 0x340   :  { %v701_v2 = vadd.f32 %v1092_v62, %v700_v0 }
 0x341   :  { %v696_v3 = vrot.slane %v695_v1, 2 }
 0x342   :  { %v702_v5 = vrot.slane %v701_v2, 2 }
 0x343   :  { %v697_v6 = vadd.f32 %v696_v3, %v695_v1 }
 0x344   :  { %v703_v7 = vadd.f32 %v702_v5, %v701_v2 }
 0x345   :  { %v698_v4 = vrot.slane %v697_v6, 1 }
 0x346   :  { %v704_v8 = vrot.slane %v703_v7, 1 }
 0x347   :  { %v699_v9 = vadd.f32 %v698_v4, %v697_v6 }
 0x348   :  { %v705_v10 = vadd.f32 %v704_v8, %v703_v7 }
 0x349   :  { %1093 = vlog2.f32 %v699_v9 }
 0x34a   :  { %1095 = vrcp.f32 %v699_v9 }
 0x34b   :  { %1097 = vlog2.f32 %v705_v10 }
 0x34c   :  { %1099 = vrcp.f32 %v705_v10 }
 0x353   :  { %v1094_v17 = vpop.eup %1093 }
 0x354   :  { %v1096_v18 = vpop.eup %1095  ;;  %v707_v19 = vmul.f32 0.6931472, %v1094_v17 }
 0x355   :  { %v1098_v20 = vpop.eup %1097  ;;  %v713_v24 = vmul.f32 %v1096_v18, %v1090_v61 }
 0x356   :  { %v1100_v22 = vpop.eup %1099  ;;  %v710_v23 = vsub.f32 %v688_v57, %v707_v19  ;;  %v709_v25 = vmul.f32 0.6931472, %v1098_v20 }
 0x357   :  { %v715_v30 = vmul.f32 %v1100_v22, %v1092_v62 }
 0x358   :  { %v716_v27 = vmul.f32 %v713_v24, %v710_v23  ;;  %v748_v28 = vmul.f32 %v889_v21, %v710_v23  ;;  %v711_v29 = vsub.f32 %v689_v58, %v709_v25 }
 0x35a   :  { %v718_v31 = vrot.slane %v716_v27, 4  ;;  %v750_v33 = vrot.slane %v748_v28, 4  ;;  %v717_v34 = vmul.f32 %v715_v30, %v711_v29  ;;  %v749_v35 = vmul.f32 %v890_v26, %v711_v29 }
 0x35c   :  { %v719_v36 = vadd.f32 %v718_v31, %v716_v27  ;;  %v751_v37 = vadd.f32 %v750_v33, %v748_v28  ;;  %v724_v32 = vrot.slane %v717_v34, 4  ;;  %v756_v38 = vrot.slane %v749_v35, 4 }
 0x35e   :  { %v720_v39 = vrot.slane %v719_v36, 2  ;;  %v752_v40 = vrot.slane %v751_v37, 2  ;;  %v725_v41 = vadd.f32 %v724_v32, %v717_v34  ;;  %v757_v42 = vadd.f32 %v756_v38, %v749_v35 }
 0x360   :  { %v721_v43 = vadd.f32 %v720_v39, %v719_v36  ;;  %v753_v45 = vadd.f32 %v752_v40, %v751_v37  ;;  %v726_v46 = vrot.slane %v725_v41, 2  ;;  %v758_v12 = vrot.slane %v757_v42, 2 }
 0x362   :  { %v722_v47 = vrot.slane %v721_v43, 1  ;;  %v754_v48 = vrot.slane %v753_v45, 1  ;;  %v727_v49 = vadd.f32 %v726_v46, %v725_v41  ;;  %v759_v50 = vadd.f32 %v758_v12, %v757_v42 }
 0x364   :  { %v728_v51 = vrot.slane %v727_v49, 1  ;;  %v760_v53 = vrot.slane %v759_v50, 1  ;;  %v723_v54 = vadd.f32 %v722_v47, %v721_v43  ;;  %v755_v55 = vadd.f32 %v754_v48, %v753_v45 }
 0x366   :  { %v729_v56 = vadd.f32 %v728_v51, %v727_v49  ;;  %v730_v57 = vsub.f32 0.0, %v723_v54  ;;  %v761_v58 = vadd.f32 %v760_v53, %v759_v50 }
 0x368   :  { %v731_v59 = vsub.f32 0.0, %v729_v56  ;;  %v764_v60 = vcombine.low %v755_v55, %v761_v58 }
 0x36a   :  { %v771_v61 = vrot.slane %v764_v60, %v1459_v44  ;;  %v807_v62 = vcombine.low %v730_v57, %v731_v59 }
 0x36c   :  { %v778_v63 = vrot.slane %v771_v61, %v1459_v44  ;;  %v814_v0 = vrot.slane %v807_v62, %v1459_v44 }
 0x36e   :  { %784 = vst.msk [vmem:[#allocation2] ss:$4 sm:$0x3] %vm1462_vm3, %v778_v63  ;;  %v821_v1 = vrot.slane %v814_v0, %v1459_v44 }
 0x370   :  { %824 = vst.msk [vmem:[#allocation2 + $0x2] ss:$4 sm:$0x3] %vm1462_vm3, %v821_v1 }
 0x371   :  { %1112 = shalt.err (!%p1109_p4)
}
 0x372   :  { %s1113_s24 = scalar_lea.hbm %s1506_s8, 128 }
 0x373   :  { %p1114_p5 = scmp.ne.s32.totalorder %s1506_s8, %s1113_s24  ;;  %p1117_p6 = scmp.lt.u32.totalorder %s1113_s24, %s1506_s8 }
 0x375   :  { %p1119_p7 = pnand %p1117_p6, %p1114_p5 }
 0x377   :  { %1122 = shalt.err (!%p1119_p7)
}
 0x378   :  { %834 = dma.vmem_to_hbm [thread:$0]  %s832_s3, 128, %s1506_s8, [#allocation3]  }
 0x379   :  { %1123 = dma.done.wait [#allocation3], 128  }
 0x37a   :  { %1124 = vsyncadd [#allocation3], 4294967168 }
 0x37b   :  { %838 = vsyncpa [#allocation3], 1 }

</bundles_post_ra>
